<compile_context>
chip_gen: v7x
topology: tpu7x:2x2x1
jax: 0.10.0
libtpu: 0.0.40
codegen_flags: <defaults>
</compile_context>

<pallas_src>
import functools

import jax
import jax.numpy as jnp
from jax.experimental import pallas as pl
from jax.experimental.pallas import tpu as pltpu

NEG_SLOPE = 0.01   # torch.nn.LeakyReLU default
LANE = 128         # TPU lane width


def _round_up(n, m):
    return (n + m - 1) // m * m


def _leaky_relu(h):
    return jnp.where(h > 0, h, NEG_SLOPE * h)


def dnn_kernel(x_ref, w_in_ref, b_in_ref, w_hid_ref, b_hid_ref,
               w_out_ref, b_out_ref, o_ref):
    # Hoisted once per tile (JAX does not CSE broadcasts inside the unroll).
    b_in = b_in_ref[...]            # (1, Dh) f32
    w_out = w_out_ref[...]          # (1, Dh) f32
    b_out = b_out_ref[0, 0]         # scalar f32 (SMEM)

    # Input layer: bf16 matmul on the MXU, f32 accumulation, f32 bias + act.
    h = jnp.dot(x_ref[...], w_in_ref[...],
                preferred_element_type=jnp.float32) + b_in
    h = _leaky_relu(h)

    # Hidden layers: static unroll (num_layer is small, keeps LLO visibility).
    num_layer = w_hid_ref.shape[0]
    for l in range(num_layer):
        h = jnp.dot(h.astype(jnp.bfloat16), w_hid_ref[l],
                    preferred_element_type=jnp.float32) + b_hid_ref[l]
        h = _leaky_relu(h)

    # Output layer Linear(H, 1) as a lane reduction (avoids an N=1 MXU pass).
    # Padded hidden columns are exactly zero, so they contribute nothing.
    o_ref[...] = jnp.sum(h * w_out, axis=-1, keepdims=True) + b_out


@functools.partial(jax.jit, static_argnames=("tb",))
def dnn_forward(x, params, *, tb=1024):
    """Fused DNN forward pass, tiled over the batch dimension."""
    w_in, b_in, w_hid, b_hid, w_out, b_out = params
    batch, input_dim = x.shape
    num_hidden = w_in.shape[1]
    num_layer = w_hid.shape[0]

    # Pad feature/hidden dims to the 128-lane width; pick a batch tile and pad
    # the batch up to a multiple of it (padded rows are sliced off at the end).
    d_in = _round_up(input_dim, LANE)
    d_h = _round_up(num_hidden, LANE)
    tile = tb if batch >= tb else _round_up(batch, LANE)
    bp = _round_up(batch, tile)

    f32, bf16 = jnp.float32, jnp.bfloat16
    xp = jnp.zeros((bp, d_in), bf16).at[:batch, :input_dim].set(x.astype(bf16))
    w_in_p = jnp.zeros((d_in, d_h), bf16).at[:input_dim, :num_hidden].set(
        w_in.astype(bf16))
    b_in_p = jnp.zeros((1, d_h), f32).at[:, :num_hidden].set(b_in.astype(f32))
    w_hid_p = jnp.zeros((num_layer, d_h, d_h), bf16).at[
        :, :num_hidden, :num_hidden].set(w_hid.astype(bf16))
    b_hid_p = jnp.zeros((num_layer, 1, d_h), f32).at[
        :, :, :num_hidden].set(b_hid.astype(f32))
    w_out_p = jnp.zeros((1, d_h), f32).at[0, :num_hidden].set(
        w_out[:, 0].astype(f32))
    b_out_p = b_out.reshape(1, 1).astype(f32)

    # Advisory cost estimate for XLA scheduling around the custom call.
    flops = 2 * batch * (input_dim * num_hidden
                         + num_layer * num_hidden * num_hidden + num_hidden)
    bytes_accessed = (xp.size * 2 + bp * 4
                      + (w_in_p.size + w_hid_p.size) * 2
                      + (b_in_p.size + b_hid_p.size + w_out_p.size + 1) * 4)

    out = pl.pallas_call(
        dnn_kernel,
        out_shape=jax.ShapeDtypeStruct((bp, 1), jnp.float32),
        grid_spec=pltpu.PrefetchScalarGridSpec(
            num_scalar_prefetch=0,
            grid=(bp // tile,),
            in_specs=[
                # x: one batch tile per grid step (auto double-buffered).
                pl.BlockSpec((tile, d_in), lambda i: (i, 0)),
                # Weights / biases: constant block index => resident in VMEM.
                pl.BlockSpec((d_in, d_h), lambda i: (0, 0)),
                pl.BlockSpec((1, d_h), lambda i: (0, 0)),
                pl.BlockSpec((num_layer, d_h, d_h), lambda i: (0, 0, 0)),
                pl.BlockSpec((num_layer, 1, d_h), lambda i: (0, 0, 0)),
                pl.BlockSpec((1, d_h), lambda i: (0, 0)),
                # Output-layer bias: scalar in SMEM.
                pl.BlockSpec(memory_space=pltpu.MemorySpace.SMEM),
            ],
            out_specs=pl.BlockSpec((tile, 1), lambda i: (i, 0)),
        ),
        compiler_params=pltpu.CompilerParams(
            dimension_semantics=("parallel",)),
        cost_estimate=pl.CostEstimate(
            flops=flops, transcendentals=0, bytes_accessed=bytes_accessed),
    )(xp, w_in_p, b_in_p, w_hid_p, b_hid_p, w_out_p, b_out_p)

    return out[:batch]


def init_params(key, num_layer, num_hidden, input_dim):
    """Init matching torch.nn.Linear's default U(-1/sqrt(fan_in), +1/sqrt(fan_in)).

    Weights are stored as (in_features, out_features), i.e. the transpose of
    PyTorch's (out, in) convention, so the kernel computes y = x @ W + b.
    """
    ks = jax.random.split(key, 6)

    def uni(k, shape, fan_in):
        bound = 1.0 / jnp.sqrt(jnp.float32(fan_in))
        return jax.random.uniform(k, shape, jnp.float32, -bound, bound)

    w_in = uni(ks[0], (input_dim, num_hidden), input_dim)
    b_in = uni(ks[1], (1, num_hidden), input_dim)
    w_hid = uni(ks[2], (num_layer, num_hidden, num_hidden), num_hidden)
    b_hid = uni(ks[3], (num_layer, 1, num_hidden), num_hidden)
    w_out = uni(ks[4], (num_hidden, 1), num_hidden)
    b_out = uni(ks[5], (1, 1), num_hidden)
    return (w_in, b_in, w_hid, b_hid, w_out, b_out)


def dnn_reference_f32(x, params):
    """Pure-JAX f32 reference (matches the PyTorch module numerics)."""
    w_in, b_in, w_hid, b_hid, w_out, b_out = params
    h = x @ w_in + b_in[0]
    h = jnp.where(h > 0, h, NEG_SLOPE * h)
    for l in range(w_hid.shape[0]):
        h = h @ w_hid[l] + b_hid[l, 0]
        h = jnp.where(h > 0, h, NEG_SLOPE * h)
    return h @ w_out + b_out[0]


def dnn_reference_bf16(x, params):
    """Pure-JAX reference with the same bf16-operand / f32-accumulate recipe."""
    w_in, b_in, w_hid, b_hid, w_out, b_out = params
    bf16 = jnp.bfloat16
    h = jnp.dot(x.astype(bf16), w_in.astype(bf16),
                preferred_element_type=jnp.float32) + b_in[0]
    h = jnp.where(h > 0, h, NEG_SLOPE * h)
    for l in range(w_hid.shape[0]):
        h = jnp.dot(h.astype(bf16), w_hid[l].astype(bf16),
                    preferred_element_type=jnp.float32) + b_hid[l, 0]
        h = jnp.where(h > 0, h, NEG_SLOPE * h)
    return jnp.sum(h * w_out[:, 0][None, :], axis=-1, keepdims=True) + b_out[0]


if __name__ == "__main__":
    # Small shapes consistent with the module: DNN(num_layer=2, num_hidden=32, input_dim=32)
    # TODO(synk): Dropout(p=0.0) / eval mode is an identity and is omitted.
    num_layer, num_hidden, input_dim, batch = 2, 32, 32, 8

    key = jax.random.PRNGKey(0)
    kx, kp = jax.random.split(key)
    x = jax.random.normal(kx, (batch, input_dim), jnp.float32)
    params = init_params(kp, num_layer, num_hidden, input_dim)

    out = dnn_forward(x, params)
    out = jax.block_until_ready(out)
    assert out.shape == (batch, 1), out.shape

    # Tight check against a reference using the same bf16/f32-acc recipe.
    ref_bf16 = dnn_reference_bf16(x, params)
    assert jnp.allclose(out, ref_bf16, atol=1e-3, rtol=1e-3), (out, ref_bf16)

    # Loose check against the full-f32 (PyTorch-equivalent) reference.
    ref_f32 = dnn_reference_f32(x, params)
    assert jnp.allclose(out, ref_f32, atol=5e-2, rtol=5e-2), (out, ref_f32)

    print("KERNEL_OK")
</pallas_src>

<mosaic_0001>
module attributes {stable_mosaic.version = 11 : i64} {
  func.func @dnn_kernel(%arg0: i32, %arg1: memref<128x128xbf16, #tpu.memory_space<vmem>>, %arg2: memref<128x128xbf16, #tpu.memory_space<vmem>>, %arg3: memref<1x128xf32, #tpu.memory_space<vmem>>, %arg4: memref<2x128x128xbf16, #tpu.memory_space<vmem>>, %arg5: memref<2x1x128xf32, #tpu.memory_space<vmem>>, %arg6: memref<1x128xf32, #tpu.memory_space<vmem>>, %arg7: memref<1x1xf32, #tpu.memory_space<smem>>, %arg8: memref<128x1xf32, #tpu.memory_space<vmem>>) attributes {dimension_semantics = [#tpu.dimension_semantics<parallel>], iteration_bounds = array<i64: 1>, scalar_prefetch = 0 : i64, scratch_operands = 0 : i64, tpu.core_type = #tpu.core_type<tc>, window_params = [{transform_indices = @transform_0, window_bounds = array<i64: 128, 128>}, {pipeline_mode = #tpu.pipeline_mode<synchronous>, transform_indices = @transform_1, window_bounds = array<i64: 128, 128>}, {pipeline_mode = #tpu.pipeline_mode<synchronous>, transform_indices = @transform_2, window_bounds = array<i64: 1, 128>}, {pipeline_mode = #tpu.pipeline_mode<synchronous>, transform_indices = @transform_3, window_bounds = array<i64: 2, 128, 128>}, {pipeline_mode = #tpu.pipeline_mode<synchronous>, transform_indices = @transform_4, window_bounds = array<i64: 2, 1, 128>}, {pipeline_mode = #tpu.pipeline_mode<synchronous>, transform_indices = @transform_5, window_bounds = array<i64: 1, 128>}, {transform_indices = @transform_6, window_bounds = array<i64: 1, 1>}, {transform_indices = @transform_7, window_bounds = array<i64: 128, 1>}]} {
    %c0 = arith.constant 0 : index
    %c0_0 = arith.constant 0 : index
    %0 = vector.load %arg3[%c0, %c0_0] : memref<1x128xf32, #tpu.memory_space<vmem>>, vector<1x128xf32>
    %c0_1 = arith.constant 0 : index
    %c0_2 = arith.constant 0 : index
    %1 = vector.load %arg6[%c0_1, %c0_2] : memref<1x128xf32, #tpu.memory_space<vmem>>, vector<1x128xf32>
    %c0_3 = arith.constant 0 : index
    %c0_4 = arith.constant 0 : index
    %2 = memref.load %arg7[%c0_3, %c0_4] : memref<1x1xf32, #tpu.memory_space<smem>>
    %c0_5 = arith.constant 0 : index
    %c0_6 = arith.constant 0 : index
    %3 = vector.load %arg1[%c0_5, %c0_6] : memref<128x128xbf16, #tpu.memory_space<vmem>>, vector<128x128xbf16>
    %c0_7 = arith.constant 0 : index
    %c0_8 = arith.constant 0 : index
    %4 = vector.load %arg2[%c0_7, %c0_8] : memref<128x128xbf16, #tpu.memory_space<vmem>>, vector<128x128xbf16>
    %cst = arith.constant dense<0.000000e+00> : vector<128x128xf32>
    %5 = tpu.matmul %3, %4, %cst {dimension_numbers = #tpu.dot_dimension_numbers<[1], [0], [0], [1], [0, 0, 1, 1], [], []>} : vector<128x128xbf16>, vector<128x128xbf16>, vector<128x128xf32> -> vector<128x128xf32>
    %6 = vector.broadcast %0 : vector<1x128xf32> to vector<128x128xf32>
    %7 = arith.addf %5, %6 : vector<128x128xf32>
    %cst_9 = arith.constant 0.000000e+00 : f32
    %8 = vector.broadcast %cst_9 : f32 to vector<128x128xf32>
    %9 = arith.cmpf ogt, %7, %8 : vector<128x128xf32>
    %cst_10 = arith.constant 0.00999999977 : f32
    %10 = vector.broadcast %cst_10 : f32 to vector<128x128xf32>
    %11 = arith.mulf %10, %7 : vector<128x128xf32>
    %12 = arith.select %9, %7, %11 : vector<128x128xi1>, vector<128x128xf32>
    %13 = arith.truncf %12 : vector<128x128xf32> to vector<128x128xbf16>
    %c0_11 = arith.constant 0 : index
    %c0_12 = arith.constant 0 : index
    %c0_13 = arith.constant 0 : index
    %14 = vector.load %arg4[%c0_11, %c0_12, %c0_13] : memref<2x128x128xbf16, #tpu.memory_space<vmem>>, vector<1x128x128xbf16>
    %15 = vector.shape_cast %14 : vector<1x128x128xbf16> to vector<128x128xbf16>
    %cst_14 = arith.constant dense<0.000000e+00> : vector<128x128xf32>
    %16 = tpu.matmul %13, %15, %cst_14 {dimension_numbers = #tpu.dot_dimension_numbers<[1], [0], [0], [1], [0, 0, 1, 1], [], []>} : vector<128x128xbf16>, vector<128x128xbf16>, vector<128x128xf32> -> vector<128x128xf32>
    %c0_15 = arith.constant 0 : index
    %c0_16 = arith.constant 0 : index
    %c0_17 = arith.constant 0 : index
    %17 = vector.load %arg5[%c0_15, %c0_16, %c0_17] : memref<2x1x128xf32, #tpu.memory_space<vmem>>, vector<1x1x128xf32>
    %18 = vector.shape_cast %17 : vector<1x1x128xf32> to vector<1x128xf32>
    %19 = vector.broadcast %18 : vector<1x128xf32> to vector<128x128xf32>
    %20 = arith.addf %16, %19 : vector<128x128xf32>
    %cst_18 = arith.constant 0.000000e+00 : f32
    %21 = vector.broadcast %cst_18 : f32 to vector<128x128xf32>
    %22 = arith.cmpf ogt, %20, %21 : vector<128x128xf32>
    %cst_19 = arith.constant 0.00999999977 : f32
    %23 = vector.broadcast %cst_19 : f32 to vector<128x128xf32>
    %24 = arith.mulf %23, %20 : vector<128x128xf32>
    %25 = arith.select %22, %20, %24 : vector<128x128xi1>, vector<128x128xf32>
    %26 = arith.truncf %25 : vector<128x128xf32> to vector<128x128xbf16>
    %c1 = arith.constant 1 : index
    %c0_20 = arith.constant 0 : index
    %c0_21 = arith.constant 0 : index
    %27 = vector.load %arg4[%c1, %c0_20, %c0_21] : memref<2x128x128xbf16, #tpu.memory_space<vmem>>, vector<1x128x128xbf16>
    %28 = vector.shape_cast %27 : vector<1x128x128xbf16> to vector<128x128xbf16>
    %cst_22 = arith.constant dense<0.000000e+00> : vector<128x128xf32>
    %29 = tpu.matmul %26, %28, %cst_22 {dimension_numbers = #tpu.dot_dimension_numbers<[1], [0], [0], [1], [0, 0, 1, 1], [], []>} : vector<128x128xbf16>, vector<128x128xbf16>, vector<128x128xf32> -> vector<128x128xf32>
    %c1_23 = arith.constant 1 : index
    %c0_24 = arith.constant 0 : index
    %c0_25 = arith.constant 0 : index
    %30 = vector.load %arg5[%c1_23, %c0_24, %c0_25] : memref<2x1x128xf32, #tpu.memory_space<vmem>>, vector<1x1x128xf32>
    %31 = vector.shape_cast %30 : vector<1x1x128xf32> to vector<1x128xf32>
    %32 = vector.broadcast %31 : vector<1x128xf32> to vector<128x128xf32>
    %33 = arith.addf %29, %32 : vector<128x128xf32>
    %cst_26 = arith.constant 0.000000e+00 : f32
    %34 = vector.broadcast %cst_26 : f32 to vector<128x128xf32>
    %35 = arith.cmpf ogt, %33, %34 : vector<128x128xf32>
    %cst_27 = arith.constant 0.00999999977 : f32
    %36 = vector.broadcast %cst_27 : f32 to vector<128x128xf32>
    %37 = arith.mulf %36, %33 : vector<128x128xf32>
    %38 = arith.select %35, %33, %37 : vector<128x128xi1>, vector<128x128xf32>
    %39 = vector.broadcast %1 : vector<1x128xf32> to vector<128x128xf32>
    %40 = arith.mulf %38, %39 : vector<128x128xf32>
    %cst_28 = arith.constant dense<0.000000e+00> : vector<128xf32>
    %41 = vector.multi_reduction <add>, %40, %cst_28 [1] : vector<128x128xf32> to vector<128xf32>
    %42 = vector.shape_cast %41 : vector<128xf32> to vector<128x1xf32>
    %43 = vector.broadcast %2 : f32 to vector<128x1xf32>
    %44 = arith.addf %42, %43 : vector<128x1xf32>
    %c0_29 = arith.constant 0 : index
    %c0_30 = arith.constant 0 : index
    %45 = vector.load %arg8[%c0_29, %c0_30] : memref<128x1xf32, #tpu.memory_space<vmem>>, vector<128x1xf32>
    tpu.vector_store %arg8[%c0_29, %c0_30], %44 {strides = array<i32>} : memref<128x1xf32, #tpu.memory_space<vmem>>, vector<128x1xf32>,
    return
  }
  func.func @transform_0(%arg0: i32) -> (i32, i32) {
    %c0_i32 = arith.constant 0 : i32
    %c0_i32_0 = arith.constant 0 : i32
    return %arg0, %c0_i32 : i32, i32
  }
  func.func @transform_1(%arg0: i32) -> (i32, i32) {
    %c0_i32 = arith.constant 0 : i32
    %c0_i32_0 = arith.constant 0 : i32
    %c0_i32_1 = arith.constant 0 : i32
    return %c0_i32, %c0_i32_0 : i32, i32
  }
  func.func @transform_2(%arg0: i32) -> (i32, i32) {
    %c0_i32 = arith.constant 0 : i32
    %c0_i32_0 = arith.constant 0 : i32
    %c0_i32_1 = arith.constant 0 : i32
    return %c0_i32, %c0_i32_0 : i32, i32
  }
  func.func @transform_3(%arg0: i32) -> (i32, i32, i32) {
    %c0_i32 = arith.constant 0 : i32
    %c0_i32_0 = arith.constant 0 : i32
    %c0_i32_1 = arith.constant 0 : i32
    %c0_i32_2 = arith.constant 0 : i32
    return %c0_i32, %c0_i32_0, %c0_i32_1 : i32, i32, i32
  }
  func.func @transform_4(%arg0: i32) -> (i32, i32, i32) {
    %c0_i32 = arith.constant 0 : i32
    %c0_i32_0 = arith.constant 0 : i32
    %c0_i32_1 = arith.constant 0 : i32
    %c0_i32_2 = arith.constant 0 : i32
    return %c0_i32, %c0_i32_0, %c0_i32_1 : i32, i32, i32
  }
  func.func @transform_5(%arg0: i32) -> (i32, i32) {
    %c0_i32 = arith.constant 0 : i32
    %c0_i32_0 = arith.constant 0 : i32
    %c0_i32_1 = arith.constant 0 : i32
    return %c0_i32, %c0_i32_0 : i32, i32
  }
  func.func @transform_6(%arg0: i32) -> (i32, i32) {
    %c0_i32 = arith.constant 0 : i32
    %c0_i32_0 = arith.constant 0 : i32
    %c0_i32_1 = arith.constant 0 : i32
    return %c0_i32, %c0_i32_0 : i32, i32
  }
  func.func @transform_7(%arg0: i32) -> (i32, i32) {
    %c0_i32 = arith.constant 0 : i32
    %c0_i32_0 = arith.constant 0 : i32
    return %arg0, %c0_i32 : i32, i32
  }
}

</mosaic_0001>

<bundles_post_ra>
// kernel: dnn_forward.1
= control target key start
LH: loop header
LB: loop body
LE: loop exit
PB: predicated region body
PF: predicated region fallthrough
CT: control target
= control target key end

     0   :  { %s1408_s1 = inlined_call_operand.vmem [shape: bf16[128,128], index: 1, kind: input, shape index: {}]   ;;  %s1409_s0 = inlined_call_operand.vmem [shape: bf16[128,128], index: 0, kind: input, shape index: {}]   ;;  %s1410_s3 = inlined_call_operand.vmem [shape: bf16[2,128,128], index: 3, kind: input, shape index: {}]   ;;  %s1411_s2 = inlined_call_operand.vmem [shape: f32[1,128], index: 2, kind: input, shape index: {}]   ;;  %s1412_s4 = inlined_call_operand.vmem [shape: f32[2,1,128], index: 4, kind: input, shape index: {}]   ;;  %s1413_s5 = inlined_call_operand.vmem [shape: f32[1,128], index: 5, kind: input, shape index: {}]   ;;  %s1414_s6 = inlined_call_operand.<no memory space> [shape: f32[1,1], index: 6, kind: input, shape index: {}]   ;;  %s1415_s7 = inlined_call_operand.vmem [shape: f32[128,1], index: 7, kind: output, shape index: {}]  }
   0x1   :  { %v1065_v0 = vld [vmem:[%s1408_s1] sm:$0xff]   ;;  %v1066_v1 = vld [vmem:[%s1408_s1 + $0x8] sm:$0xff]   ;;  %v1067_v2 = vld [vmem:[%s1408_s1 + $0x10] sm:$0xff]  }
   0x2   :  { %953 = vmatprep.subr.bf16.mxu0 %v1065_v0  ;;  %v1068_v3 = vld [vmem:[%s1408_s1 + $0x18] sm:$0xff]   ;;  %v1073_v4 = vld [vmem:[%s1409_s0] sm:$0xff]   ;;  %v1070_v6 = vld [vmem:[%s1408_s1 + $0x28] sm:$0xff]  }
   0x3   :  { %954 = vmatpush3.bf16.msra.mxu0 %v1065_v0  ;;  %969 = vmatprep.mubr.bf16.mxu0 %v1073_v4  ;;  %v1069_v5 = vld [vmem:[%s1408_s1 + $0x20] sm:$0xff]   ;;  %v1082_v8 = vld [vmem:[%s1410_s3 + $0x8] sm:$0xff]   ;;  %v1071_v9 = vld [vmem:[%s1408_s1 + $0x30] sm:$0xff]  }
   0x4   :  { %955 = vmatprep.subr.bf16.mxu0 %v1066_v1  ;;  %v1081_v7 = vld [vmem:[%s1410_s3] sm:$0xff]   ;;  %v1083_v10 = vld [vmem:[%s1410_s3 + $0x10] sm:$0xff]   ;;  %v1072_v11 = vld [vmem:[%s1408_s1 + $0x38] sm:$0xff]  }
   0x5   :  { %985 = vmatprep.subr.bf16.mxu1 %v1081_v7  ;;  %v1084_v12 = vld [vmem:[%s1410_s3 + $0x18] sm:$0xff]   ;;  %v1085_v13 = vld [vmem:[%s1410_s3 + $0x20] sm:$0xff]   ;;  %v1074_v14 = vld [vmem:[%s1409_s0 + $0x8] sm:$0xff]  }
   0x6   :  { %986 = vmatpush3.bf16.msra.mxu1 %v1081_v7  ;;  %v1075_v15 = vld [vmem:[%s1409_s0 + $0x10] sm:$0xff]   ;;  %v1076_v16 = vld [vmem:[%s1409_s0 + $0x18] sm:$0xff]   ;;  %v1077_v17 = vld [vmem:[%s1409_s0 + $0x20] sm:$0xff]  }
   0x7   :  { %956 = vmatpush3.bf16.msra.mxu0 %v1066_v1  ;;  %987 = vmatprep.subr.bf16.mxu1 %v1082_v8  ;;  %v1078_v18 = vld [vmem:[%s1409_s0 + $0x28] sm:$0xff]   ;;  %v1079_v19 = vld [vmem:[%s1409_s0 + $0x30] sm:$0xff]   ;;  %v1080_v20 = vld [vmem:[%s1409_s0 + $0x38] sm:$0xff]  }
   0x8   :  { %957 = vmatprep.subr.bf16.mxu0 %v1067_v2  ;;  %v1086_v21 = vld [vmem:[%s1410_s3 + $0x28] sm:$0xff]   ;;  %v1087_v22 = vld [vmem:[%s1410_s3 + $0x30] sm:$0xff]   ;;  %v1088_v23 = vld [vmem:[%s1410_s3 + $0x38] sm:$0xff]  }
   0x9   :  { %v1089_v24 = vld [vmem:[%s1410_s3 + $0x40] sm:$0xff]   ;;  %v1215_v25 = vld [vmem:[%s1410_s3 + $0x48] sm:$0xff]   ;;  %v1221_v26 = vld [vmem:[%s1410_s3 + $0x50] sm:$0xff]  }
   0xa   :  { %988 = vmatpush3.bf16.msra.mxu1 %v1082_v8  ;;  %v1228_v27 = vld [vmem:[%s1410_s3 + $0x58] sm:$0xff]   ;;  %v1235_v28 = vld [vmem:[%s1410_s3 + $0x60] sm:$0xff]  }
   0xb   :  { %958 = vmatpush3.bf16.msra.mxu0 %v1067_v2  ;;  %989 = vmatprep.subr.bf16.mxu1 %v1083_v10  ;;  %v1243_v29 = vld [vmem:[%s1411_s2] ss:$0 sm:$0xff] }
   0xc   :  { %959 = vmatprep.subr.bf16.mxu0 %v1068_v3 }
   0xe   :  { %990 = vmatpush3.bf16.msra.mxu1 %v1083_v10 }
   0xf   :  { %960 = vmatpush3.bf16.msra.mxu0 %v1068_v3  ;;  %991 = vmatprep.subr.bf16.mxu1 %v1084_v12 }
  0x10   :  { %961 = vmatprep.subr.bf16.mxu0 %v1069_v5 }
  0x12   :  { %992 = vmatpush3.bf16.msra.mxu1 %v1084_v12 }
  0x13   :  { %962 = vmatpush3.bf16.msra.mxu0 %v1069_v5  ;;  %993 = vmatprep.subr.bf16.mxu1 %v1085_v13 }
  0x14   :  { %963 = vmatprep.subr.bf16.mxu0 %v1070_v6 }
  0x16   :  { %994 = vmatpush3.bf16.msra.mxu1 %v1085_v13 }
  0x17   :  { %964 = vmatpush3.bf16.msra.mxu0 %v1070_v6  ;;  %995 = vmatprep.subr.bf16.mxu1 %v1086_v21 }
  0x18   :  { %965 = vmatprep.subr.bf16.mxu0 %v1071_v9 }
  0x1a   :  { %996 = vmatpush3.bf16.msra.mxu1 %v1086_v21 }
  0x1b   :  { %966 = vmatpush3.bf16.msra.mxu0 %v1071_v9  ;;  %997 = vmatprep.subr.bf16.mxu1 %v1087_v22 }
  0x1c   :  { %967 = vmatprep.subr.bf16.mxu0 %v1072_v11 }
  0x1e   :  { %998 = vmatpush3.bf16.msra.mxu1 %v1087_v22 }
  0x1f   :  { %968 = vmatpush3.bf16.msra.mxu0 %v1072_v11  ;;  %999 = vmatprep.subr.bf16.mxu1 %v1088_v23 }
  0x20   :  { %1017 = vmatprep.subr.bf16.mxu0 %v1089_v24 }
  0x22   :  { %970 = vmatmul.mubr.bf16.vlgmr.msra.gmra.mrb[0].mxu0 %v1074_v14  ;;  %1000 = vmatpush3.bf16.msra.mxu1 %v1088_v23 }
  0x23   :  { %973 = vmatprep.mubr.bf16.mxu0 %v1075_v15  ;;  %1049 = vmatprep.subr.bf16.mxu1 %v1089_v24 }
  0x24   :  { %1018 = vmatpush3.bf16.msra.mxu0 %v1089_v24 }
  0x25   :  { %1019 = vmatprep.subr.bf16.mxu0 %v1215_v25 }
  0x28   :  { %1020 = vmatpush3.bf16.msra.mxu0 %v1215_v25 }
  0x29   :  { %1021 = vmatprep.subr.bf16.mxu0 %v1221_v26 }
  0x2a   :  { %974 = vmatmul.mubr.bf16.gmra.mrb[4].mxu0 %v1076_v16 }
  0x2b   :  { %977 = vmatprep.mubr.bf16.mxu0 %v1077_v17 }
  0x2c   :  { %1022 = vmatpush3.bf16.msra.mxu0 %v1221_v26 }
  0x2d   :  { %1023 = vmatprep.subr.bf16.mxu0 %v1228_v27 }
  0x30   :  { %1024 = vmatpush3.bf16.msra.mxu0 %v1228_v27 }
  0x31   :  { %1025 = vmatprep.subr.bf16.mxu0 %v1235_v28 }
  0x32   :  { %978 = vmatmul.mubr.bf16.gmra.mrb[8].mxu0 %v1078_v18 }
  0x33   :  { %981 = vmatprep.mubr.bf16.mxu0 %v1079_v19 }
  0x34   :  { %1026 = vmatpush3.bf16.msra.mxu0 %v1235_v28 }
  0x3a   :  { %982 = vmatmul.mubr.bf16.gmra.mrb[12].mxu0 %v1080_v20 }
  0xf5   :  { %v971_v30 = vpop.f32.mrb[0].mxu0 }
  0xf6   :  { %v208_v31 = vadd.f32 %v971_v30, %v1243_v29  ;;  %v199_v32 = vpop.f32.mrb[1].mxu0 }
  0xf7   :  { %v200_v33 = vadd.f32 %v1243_v29, %v199_v32  ;;  %v972_v34 = vpop.f32.mrb[2].mxu0 }
  0xf8   :  { %v280_v35 = vmul.f32 0.01, %v208_v31  ;;  %v211_v36 = vadd.f32 %v972_v34, %v1243_v29  ;;  %v202_v37 = vpop.f32.mrb[3].mxu0  ;;  %vm264_vm0 = vcmp.gt.f32.partialorder %v208_v31, 0.0 }
  0xf9   :  { %v278_v38 = vmul.f32 0.01, %v200_v33  ;;  %v203_v39 = vadd.f32 %v1243_v29, %v202_v37  ;;  %vm262_vm2 = vcmp.gt.f32.partialorder %v200_v33, 0.0 }
  0xfa   :  { %vm265_vm1 = vcmp.gt.f32.partialorder %v211_v36, 0.0  ;;  %v281_v40 = vmul.f32 0.01, %v211_v36  ;;  %v296_v42 = vsel %vm264_vm0, %v208_v31, %v280_v35 }
  0xfb   :  { %v279_v41 = vmul.f32 0.01, %v203_v39  ;;  %vm263_vm3 = vcmp.gt.f32.partialorder %v203_v39, 0.0  ;;  %v294_v45 = vsel %vm262_vm2, %v200_v33, %v278_v38 }
  0xfc   :  { %v297_v43 = vsel %vm265_vm1, %v211_v36, %v281_v40  ;;  %v1096_v40 = vld [vmem:[%s1410_s3 + $0x78] sm:$0xff]  }
  0xfd   :  { %v975_v44 = vpop.f32.mrb[4].mxu0  ;;  %v295_v46 = vsel %vm263_vm3, %v203_v39, %v279_v41  ;;  %v311_v47 = vpack.c.bf16 %v297_v43, %v296_v42  ;;  %v1281_v41 = vld [vmem:[%s1412_s4] ss:$0 sm:$0xff] }
  0xfe   :  { %v224_v48 = vadd.f32 %v975_v44, %v1243_v29  ;;  %v215_v49 = vpop.f32.mrb[5].mxu0  ;;  %v310_v50 = vpack.c.bf16 %v295_v46, %v294_v45 }
  0xff   :  { %v216_v51 = vadd.f32 %v1243_v29, %v215_v49  ;;  %v976_v52 = vpop.f32.mrb[6].mxu0 }
 0x100   :  { %v284_v53 = vmul.f32 0.01, %v224_v48  ;;  %v227_v54 = vadd.f32 %v976_v52, %v1243_v29  ;;  %v218_v55 = vpop.f32.mrb[7].mxu0  ;;  %1001 = vmatprep.mubr.bf16.mxu1 %v310_v50  ;;  %vm268_vm4 = vcmp.gt.f32.partialorder %v224_v48, 0.0 }
 0x101   :  { %v282_v56 = vmul.f32 0.01, %v216_v51  ;;  %v219_v57 = vadd.f32 %v1243_v29, %v218_v55  ;;  %1002 = vmatmul.mubr.bf16.vlgmr.msra.gmra.mrb[0].mxu1 %v311_v47  ;;  %vm266_vm5 = vcmp.gt.f32.partialorder %v216_v51, 0.0 }
 0x102   :  { %vm269_vm6 = vcmp.gt.f32.partialorder %v227_v54, 0.0  ;;  %v285_v58 = vmul.f32 0.01, %v227_v54  ;;  %1057 = vmatpush3.bf16.msra.mxu1 %v1089_v24  ;;  %v300_v60 = vsel %vm268_vm4, %v224_v48, %v284_v53 }
 0x103   :  { %vm267_vm7 = vcmp.gt.f32.partialorder %v219_v57, 0.0  ;;  %v283_v59 = vmul.f32 0.01, %v219_v57  ;;  %1050 = vmatprep.subr.bf16.mxu1 %v1215_v25  ;;  %v298_v63 = vsel %vm266_vm5, %v216_v51, %v282_v56 }
 0x104   :  { %v301_v61 = vsel %vm269_vm6, %v227_v54, %v285_v58 }
 0x105   :  { %v979_v62 = vpop.f32.mrb[8].mxu0  ;;  %v299_v0 = vsel %vm267_vm7, %v219_v57, %v283_v59  ;;  %v313_v1 = vpack.c.bf16 %v301_v61, %v300_v60 }
 0x106   :  { %v240_v2 = vadd.f32 %v979_v62, %v1243_v29  ;;  %v231_v3 = vpop.f32.mrb[9].mxu0  ;;  %v312_v4 = vpack.c.bf16 %v299_v0, %v298_v63  ;;  %1058 = vmatpush3.bf16.msra.mxu1 %v1215_v25 }
 0x107   :  { %v232_v5 = vadd.f32 %v1243_v29, %v231_v3  ;;  %v980_v6 = vpop.f32.mrb[10].mxu0  ;;  %1051 = vmatprep.subr.bf16.mxu1 %v1221_v26 }
 0x108   :  { %v288_v7 = vmul.f32 0.01, %v240_v2  ;;  %v243_v8 = vadd.f32 %v980_v6, %v1243_v29  ;;  %v234_v9 = vpop.f32.mrb[11].mxu0  ;;  %1005 = vmatprep.mubr.bf16.mxu1 %v312_v4  ;;  %vm272_vm8 = vcmp.gt.f32.partialorder %v240_v2, 0.0 }
 0x109   :  { %v286_v10 = vmul.f32 0.01, %v232_v5  ;;  %v235_v11 = vadd.f32 %v1243_v29, %v234_v9  ;;  %1006 = vmatmul.mubr.bf16.gmra.mrb[4].mxu1 %v313_v1  ;;  %vm270_vm9 = vcmp.gt.f32.partialorder %v232_v5, 0.0 }
 0x10a   :  { %vm273_vm10 = vcmp.gt.f32.partialorder %v243_v8, 0.0  ;;  %v289_v12 = vmul.f32 0.01, %v243_v8  ;;  %1059 = vmatpush3.bf16.msra.mxu1 %v1221_v26  ;;  %v304_v14 = vsel %vm272_vm8, %v240_v2, %v288_v7 }
 0x10b   :  { %vm271_vm11 = vcmp.gt.f32.partialorder %v235_v11, 0.0  ;;  %v287_v13 = vmul.f32 0.01, %v235_v11  ;;  %1052 = vmatprep.subr.bf16.mxu1 %v1228_v27  ;;  %v302_v17 = vsel %vm270_vm9, %v232_v5, %v286_v10 }
 0x10c   :  { %v305_v15 = vsel %vm273_vm10, %v243_v8, %v289_v12 }
 0x10d   :  { %v983_v16 = vpop.f32.mrb[12].mxu0  ;;  %v303_v18 = vsel %vm271_vm11, %v235_v11, %v287_v13  ;;  %v315_v19 = vpack.c.bf16 %v305_v15, %v304_v14 }
 0x10e   :  { %v256_v20 = vadd.f32 %v983_v16, %v1243_v29  ;;  %v247_v21 = vpop.f32.mrb[13].mxu0  ;;  %v314_v22 = vpack.c.bf16 %v303_v18, %v302_v17  ;;  %1060 = vmatpush3.bf16.msra.mxu1 %v1228_v27 }
 0x10f   :  { %v248_v23 = vadd.f32 %v1243_v29, %v247_v21  ;;  %v984_v24 = vpop.f32.mrb[14].mxu0  ;;  %1053 = vmatprep.subr.bf16.mxu1 %v1235_v28 }
 0x110   :  { %v292_v25 = vmul.f32 0.01, %v256_v20  ;;  %v259_v26 = vadd.f32 %v984_v24, %v1243_v29  ;;  %v250_v30 = vpop.f32.mrb[15].mxu0  ;;  %1009 = vmatprep.mubr.bf16.mxu1 %v314_v22  ;;  %vm276_vm12 = vcmp.gt.f32.partialorder %v256_v20, 0.0 }
 0x111   :  { %v290_v31 = vmul.f32 0.01, %v248_v23  ;;  %v251_v32 = vadd.f32 %v1243_v29, %v250_v30  ;;  %1010 = vmatmul.mubr.bf16.gmra.mrb[8].mxu1 %v315_v19  ;;  %vm274_vm13 = vcmp.gt.f32.partialorder %v248_v23, 0.0  ;;  %v1094_v29 = vld [vmem:[%s1410_s3 + $0x68] sm:$0xff]  }
 0x112   :  { %vm277_vm14 = vcmp.gt.f32.partialorder %v259_v26, 0.0  ;;  %v293_v33 = vmul.f32 0.01, %v259_v26  ;;  %1061 = vmatpush3.bf16.msra.mxu1 %v1235_v28  ;;  %v308_v34 = vsel %vm276_vm12, %v256_v20, %v292_v25  ;;  %1027 = vmatprep.subr.bf16.mxu0 %v1094_v29  ;;  %v1095_v28 = vld [vmem:[%s1410_s3 + $0x70] sm:$0xff]  }
 0x113   :  { %vm275_vm15 = vcmp.gt.f32.partialorder %v251_v32, 0.0  ;;  %v291_v27 = vmul.f32 0.01, %v251_v32  ;;  %v306_v36 = vsel %vm274_vm13, %v248_v23, %v290_v31  ;;  %1054 = vmatprep.subr.bf16.mxu1 %v1094_v29  ;;  %1028 = vmatpush3.bf16.msra.mxu0 %v1094_v29 }
 0x114   :  { %v309_v35 = vsel %vm277_vm14, %v259_v26, %v293_v33  ;;  %1029 = vmatprep.subr.bf16.mxu0 %v1095_v28 }
 0x115   :  { %v307_v37 = vsel %vm275_vm15, %v251_v32, %v291_v27  ;;  %v317_v38 = vpack.c.bf16 %v309_v35, %v308_v34 }
 0x116   :  { %v316_v39 = vpack.c.bf16 %v307_v37, %v306_v36  ;;  %1062 = vmatpush3.bf16.msra.mxu1 %v1094_v29 }
 0x117   :  { %1055 = vmatprep.subr.bf16.mxu1 %v1095_v28  ;;  %1030 = vmatpush3.bf16.msra.mxu0 %v1095_v28 }
 0x118   :  { %1013 = vmatprep.mubr.bf16.mxu1 %v316_v39  ;;  %1031 = vmatprep.subr.bf16.mxu0 %v1096_v40 }
 0x119   :  { %1014 = vmatmul.mubr.bf16.gmra.mrb[12].mxu1 %v317_v38 }
 0x11a   :  { %1063 = vmatpush3.bf16.msra.mxu1 %v1095_v28 }
 0x11b   :  { %1056 = vmatprep.subr.bf16.mxu1 %v1096_v40  ;;  %1032 = vmatpush3.bf16.msra.mxu0 %v1096_v40 }
 0x11e   :  { %1064 = vmatpush3.bf16.msra.mxu1 %v1096_v40 }
 0x1d4   :  { %v1003_v42 = vpop.f32.mrb[0].mxu1 }
 0x1d5   :  { %v432_v43 = vadd.f32 %v1003_v42, %v1281_v41  ;;  %v423_v44 = vpop.f32.mrb[1].mxu1 }
 0x1d6   :  { %v424_v45 = vadd.f32 %v1281_v41, %v423_v44  ;;  %v1004_v46 = vpop.f32.mrb[2].mxu1 }
 0x1d7   :  { %v504_v47 = vmul.f32 0.01, %v432_v43  ;;  %v435_v48 = vadd.f32 %v1004_v46, %v1281_v41  ;;  %v426_v49 = vpop.f32.mrb[3].mxu1  ;;  %vm488_vm0 = vcmp.gt.f32.partialorder %v432_v43, 0.0 }
 0x1d8   :  { %v502_v50 = vmul.f32 0.01, %v424_v45  ;;  %v427_v51 = vadd.f32 %v1281_v41, %v426_v49  ;;  %vm486_vm1 = vcmp.gt.f32.partialorder %v424_v45, 0.0 }
 0x1d9   :  { %vm489_vm2 = vcmp.gt.f32.partialorder %v435_v48, 0.0  ;;  %v505_v52 = vmul.f32 0.01, %v435_v48  ;;  %v520_v54 = vsel %vm488_vm0, %v432_v43, %v504_v47 }
 0x1da   :  { %vm487_vm3 = vcmp.gt.f32.partialorder %v427_v51, 0.0  ;;  %v503_v53 = vmul.f32 0.01, %v427_v51  ;;  %v518_v58 = vsel %vm486_vm1, %v424_v45, %v502_v50 }
 0x1db   :  { %v521_v55 = vsel %vm489_vm2, %v435_v48, %v505_v52 }
 0x1dc   :  { %v535_v56 = vpack.c.bf16 %v521_v55, %v520_v54  ;;  %v1007_v57 = vpop.f32.mrb[4].mxu1  ;;  %v519_v59 = vsel %vm487_vm3, %v427_v51, %v503_v53  ;;  %v1302_v51 = vld [vmem:[%s1412_s4 + $0x1] ss:$0 sm:$0xff] }
 0x1dd   :  { %v448_v60 = vadd.f32 %v1007_v57, %v1281_v41  ;;  %v439_v61 = vpop.f32.mrb[5].mxu1  ;;  %v534_v62 = vpack.c.bf16 %v519_v59, %v518_v58  ;;  %v1310_v59 = vld [vmem:[%s1413_s5] ss:$0 sm:$0xff] }
 0x1de   :  { %v440_v63 = vadd.f32 %v1281_v41, %v439_v61  ;;  %v1008_v0 = vpop.f32.mrb[6].mxu1 }
 0x1df   :  { %v508_v1 = vmul.f32 0.01, %v448_v60  ;;  %v451_v2 = vadd.f32 %v1008_v0, %v1281_v41  ;;  %v442_v3 = vpop.f32.mrb[7].mxu1  ;;  %1033 = vmatprep.mubr.bf16.mxu0 %v534_v62  ;;  %vm492_vm4 = vcmp.gt.f32.partialorder %v448_v60, 0.0 }
 0x1e0   :  { %v506_v4 = vmul.f32 0.01, %v440_v63  ;;  %v443_v5 = vadd.f32 %v1281_v41, %v442_v3  ;;  %1034 = vmatmul.mubr.bf16.vlgmr.msra.gmra.mrb[16].mxu0 %v535_v56  ;;  %vm490_vm5 = vcmp.gt.f32.partialorder %v440_v63, 0.0 }
 0x1e1   :  { %vm493_vm6 = vcmp.gt.f32.partialorder %v451_v2, 0.0  ;;  %v509_v6 = vmul.f32 0.01, %v451_v2  ;;  %v524_v8 = vsel %vm492_vm4, %v448_v60, %v508_v1 }
 0x1e2   :  { %vm491_vm7 = vcmp.gt.f32.partialorder %v443_v5, 0.0  ;;  %v507_v7 = vmul.f32 0.01, %v443_v5  ;;  %v522_v11 = vsel %vm490_vm5, %v440_v63, %v506_v4 }
 0x1e3   :  { %v525_v9 = vsel %vm493_vm6, %v451_v2, %v509_v6 }
 0x1e4   :  { %v1011_v10 = vpop.f32.mrb[8].mxu1  ;;  %v523_v12 = vsel %vm491_vm7, %v443_v5, %v507_v7  ;;  %v537_v13 = vpack.c.bf16 %v525_v9, %v524_v8 }
 0x1e5   :  { %v464_v14 = vadd.f32 %v1011_v10, %v1281_v41  ;;  %v455_v15 = vpop.f32.mrb[9].mxu1  ;;  %v536_v16 = vpack.c.bf16 %v523_v12, %v522_v11 }
 0x1e6   :  { %v456_v17 = vadd.f32 %v1281_v41, %v455_v15  ;;  %v1012_v18 = vpop.f32.mrb[10].mxu1 }
 0x1e7   :  { %v512_v19 = vmul.f32 0.01, %v464_v14  ;;  %v467_v20 = vadd.f32 %v1012_v18, %v1281_v41  ;;  %v458_v21 = vpop.f32.mrb[11].mxu1  ;;  %1037 = vmatprep.mubr.bf16.mxu0 %v536_v16  ;;  %vm496_vm8 = vcmp.gt.f32.partialorder %v464_v14, 0.0 }
 0x1e8   :  { %v510_v22 = vmul.f32 0.01, %v456_v17  ;;  %v459_v23 = vadd.f32 %v1281_v41, %v458_v21  ;;  %1038 = vmatmul.mubr.bf16.gmra.mrb[20].mxu0 %v537_v13  ;;  %vm494_vm9 = vcmp.gt.f32.partialorder %v456_v17, 0.0 }
 0x1e9   :  { %vm497_vm10 = vcmp.gt.f32.partialorder %v467_v20, 0.0  ;;  %v513_v24 = vmul.f32 0.01, %v467_v20  ;;  %v528_v26 = vsel %vm496_vm8, %v464_v14, %v512_v19 }
 0x1ea   :  { %vm495_vm11 = vcmp.gt.f32.partialorder %v459_v23, 0.0  ;;  %v511_v25 = vmul.f32 0.01, %v459_v23  ;;  %v526_v33 = vsel %vm494_vm9, %v456_v17, %v510_v22 }
 0x1eb   :  { %v529_v30 = vsel %vm497_vm10, %v467_v20, %v513_v24 }
 0x1ec   :  { %v539_v31 = vpack.c.bf16 %v529_v30, %v528_v26  ;;  %v1015_v32 = vpop.f32.mrb[12].mxu1  ;;  %v527_v27 = vsel %vm495_vm11, %v459_v23, %v511_v25 }
 0x1ed   :  { %v480_v34 = vadd.f32 %v1015_v32, %v1281_v41  ;;  %v471_v35 = vpop.f32.mrb[13].mxu1  ;;  %v538_v36 = vpack.c.bf16 %v527_v27, %v526_v33 }
 0x1ee   :  { %v472_v37 = vadd.f32 %v1281_v41, %v471_v35  ;;  %v1016_v38 = vpop.f32.mrb[14].mxu1 }
 0x1ef   :  { %v516_v39 = vmul.f32 0.01, %v480_v34  ;;  %v483_v29 = vadd.f32 %v1016_v38, %v1281_v41  ;;  %v474_v28 = vpop.f32.mrb[15].mxu1  ;;  %1041 = vmatprep.mubr.bf16.mxu1 %v538_v36  ;;  %vm500_vm12 = vcmp.gt.f32.partialorder %v480_v34, 0.0 }
 0x1f0   :  { %v514_v40 = vmul.f32 0.01, %v472_v37  ;;  %v475_v42 = vadd.f32 %v1281_v41, %v474_v28  ;;  %1042 = vmatmul.mubr.bf16.vlgmr.msra.gmra.mrb[16].mxu1 %v539_v31  ;;  %vm498_vm13 = vcmp.gt.f32.partialorder %v472_v37, 0.0 }
 0x1f1   :  { %vm501_vm14 = vcmp.gt.f32.partialorder %v483_v29, 0.0  ;;  %v517_v43 = vmul.f32 0.01, %v483_v29  ;;  %v532_v45 = vsel %vm500_vm12, %v480_v34, %v516_v39 }
 0x1f2   :  { %vm499_vm15 = vcmp.gt.f32.partialorder %v475_v42, 0.0  ;;  %v515_v44 = vmul.f32 0.01, %v475_v42  ;;  %v530_v47 = vsel %vm498_vm13, %v472_v37, %v514_v40 }
 0x1f3   :  { %v533_v46 = vsel %vm501_vm14, %v483_v29, %v517_v43 }
 0x1f4   :  { %v531_v48 = vsel %vm499_vm15, %v475_v42, %v515_v44  ;;  %v541_v49 = vpack.c.bf16 %v533_v46, %v532_v45 }
 0x1f5   :  { %v540_v50 = vpack.c.bf16 %v531_v48, %v530_v47 }
 0x1f7   :  { %1045 = vmatprep.mubr.bf16.mxu1 %v540_v50 }
 0x1f8   :  { %1046 = vmatmul.mubr.bf16.gmra.mrb[20].mxu1 %v541_v49 }
 0x2b3   :  { %v1035_v41 = vpop.f32.mrb[16].mxu0 }
 0x2b4   :  { %v658_v52 = vadd.f32 %v1035_v41, %v1302_v51  ;;  %v649_v53 = vpop.f32.mrb[17].mxu0 }
 0x2b5   :  { %v650_v54 = vadd.f32 %v1302_v51, %v649_v53  ;;  %v1036_v55 = vpop.f32.mrb[18].mxu0 }
 0x2b6   :  { %v730_v56 = vmul.f32 0.01, %v658_v52  ;;  %v661_v57 = vadd.f32 %v1036_v55, %v1302_v51  ;;  %v652_v58 = vpop.f32.mrb[19].mxu0  ;;  %vm714_vm0 = vcmp.gt.f32.partialorder %v658_v52, 0.0 }
 0x2b7   :  { %v728_v60 = vmul.f32 0.01, %v650_v54  ;;  %v653_v61 = vadd.f32 %v1302_v51, %v652_v58  ;;  %vm712_vm1 = vcmp.gt.f32.partialorder %v650_v54, 0.0 }
 0x2b8   :  { %v731_v62 = vmul.f32 0.01, %v661_v57  ;;  %v746_v63 = vsel %vm714_vm0, %v658_v52, %v730_v56  ;;  %vm715_vm2 = vcmp.gt.f32.partialorder %v661_v57, 0.0  ;;  %vm831_vm0 = vcmask 7168  }
 0x2b9   :  { %v729_v0 = vmul.f32 0.01, %v653_v61  ;;  %v768_v1 = vmul.f32 %v1310_v59, %v746_v63  ;;  %v744_v2 = vsel %vm712_vm1, %v650_v54, %v728_v60  ;;  %vm713_vm3 = vcmp.gt.f32.partialorder %v653_v61, 0.0 }
 0x2ba   :  { %v766_v3 = vmul.f32 %v1310_v59, %v744_v2  ;;  %v747_v4 = vsel %vm715_vm2, %v661_v57, %v731_v62 }
 0x2bb   :  { %786 = vadd.xlane.f32.xlu1 %v768_v1  ;;  %v1039_v5 = vpop.f32.mrb[20].mxu0  ;;  %v745_v6 = vsel %vm713_vm3, %v653_v61, %v729_v0  ;;  %v769_v11 = vmul.f32 %v1310_v59, %v747_v4 }
 0x2bc   :  { %v674_v7 = vadd.f32 %v1039_v5, %v1302_v51  ;;  %v665_v8 = vpop.f32.mrb[21].mxu0  ;;  %782 = vadd.xlane.f32.xlu0 %v766_v3  ;;  %v767_v15 = vmul.f32 %v1310_v59, %v745_v6  ;;  %v814_v5 = vstv %s1414_s6 }
 0x2bd   :  { %v666_v9 = vadd.f32 %v1302_v51, %v665_v8  ;;  %v1040_v10 = vpop.f32.mrb[22].mxu0 }
 0x2be   :  { %v734_v12 = vmul.f32 0.01, %v674_v7  ;;  %v677_v13 = vadd.f32 %v1040_v10, %v1302_v51  ;;  %v668_v14 = vpop.f32.mrb[23].mxu0  ;;  %vm718_vm4 = vcmp.gt.f32.partialorder %v674_v7, 0.0 }
 0x2bf   :  { %v732_v16 = vmul.f32 0.01, %v666_v9  ;;  %v669_v17 = vadd.f32 %v1302_v51, %v668_v14  ;;  %788 = vadd.xlane.f32.xlu1 %v769_v11  ;;  %vm716_vm6 = vcmp.gt.f32.partialorder %v666_v9, 0.0 }
 0x2c0   :  { %v735_v18 = vmul.f32 0.01, %v677_v13  ;;  %784 = vadd.xlane.f32.xlu0 %v767_v15  ;;  %v750_v19 = vsel %vm718_vm4, %v674_v7, %v734_v12  ;;  %vm719_vm5 = vcmp.gt.f32.partialorder %v677_v13, 0.0 }
 0x2c1   :  { %v733_v20 = vmul.f32 0.01, %v669_v17  ;;  %v772_v21 = vmul.f32 %v1310_v59, %v750_v19  ;;  %vm717_vm7 = vcmp.gt.f32.partialorder %v669_v17, 0.0  ;;  %v748_v25 = vsel %vm716_vm6, %v666_v9, %v732_v16 }
 0x2c2   :  { %v751_v22 = vsel %vm719_vm5, %v677_v13, %v735_v18  ;;  %v770_v36 = vmul.f32 %v1310_v59, %v748_v25 }
 0x2c3   :  { %v1043_v23 = vpop.f32.mrb[16].mxu1  ;;  %v773_v24 = vmul.f32 %v1310_v59, %v751_v22  ;;  %v749_v31 = vsel %vm717_vm7, %v669_v17, %v733_v20 }
 0x2c4   :  { %v690_v26 = vadd.f32 %v1043_v23, %v1302_v51  ;;  %v681_v30 = vpop.f32.mrb[17].mxu1  ;;  %794 = vadd.xlane.f32.xlu0 %v772_v21  ;;  %v771_v39 = vmul.f32 %v1310_v59, %v749_v31 }
 0x2c5   :  { %v682_v32 = vadd.f32 %v1302_v51, %v681_v30  ;;  %v1044_v33 = vpop.f32.mrb[18].mxu1  ;;  %796 = vadd.xlane.f32.xlu1 %v773_v24 }
 0x2c6   :  { %v738_v27 = vmul.f32 0.01, %v690_v26  ;;  %v693_v34 = vadd.f32 %v1044_v33, %v1302_v51  ;;  %v684_v35 = vpop.f32.mrb[19].mxu1  ;;  %vm722_vm8 = vcmp.gt.f32.partialorder %v690_v26, 0.0 }
 0x2c7   :  { %v736_v37 = vmul.f32 0.01, %v682_v32  ;;  %v685_v38 = vadd.f32 %v1302_v51, %v684_v35  ;;  %vm720_vm10 = vcmp.gt.f32.partialorder %v682_v32, 0.0 }
 0x2c8   :  { %v739_v29 = vmul.f32 0.01, %v693_v34  ;;  %790 = vadd.xlane.f32.xlu0 %v770_v36  ;;  %v754_v28 = vsel %vm722_vm8, %v690_v26, %v738_v27  ;;  %vm723_vm9 = vcmp.gt.f32.partialorder %v693_v34, 0.0 }
 0x2c9   :  { %v737_v40 = vmul.f32 0.01, %v685_v38  ;;  %792 = vadd.xlane.f32.xlu1 %v771_v39  ;;  %v776_v42 = vmul.f32 %v1310_v59, %v754_v28  ;;  %vm721_vm11 = vcmp.gt.f32.partialorder %v685_v38, 0.0  ;;  %v752_v46 = vsel %vm720_vm10, %v682_v32, %v736_v37 }
 0x2ca   :  { %v755_v43 = vsel %vm723_vm9, %v693_v34, %v739_v29  ;;  %v774_v54 = vmul.f32 %v1310_v59, %v752_v46 }
 0x2cb   :  { %v1047_v44 = vpop.f32.mrb[20].mxu1  ;;  %v777_v45 = vmul.f32 %v1310_v59, %v755_v43  ;;  %v753_v47 = vsel %vm721_vm11, %v685_v38, %v737_v40 }
 0x2cc   :  { %v706_v48 = vadd.f32 %v1047_v44, %v1302_v51  ;;  %v697_v49 = vpop.f32.mrb[21].mxu1  ;;  %802 = vadd.xlane.f32.xlu0 %v776_v42  ;;  %v775_v55 = vmul.f32 %v1310_v59, %v753_v47 }
 0x2cd   :  { %v698_v50 = vadd.f32 %v1302_v51, %v697_v49  ;;  %v1048_v41 = vpop.f32.mrb[22].mxu1  ;;  %804 = vadd.xlane.f32.xlu1 %v777_v45 }
 0x2ce   :  { %v709_v52 = vadd.f32 %v1048_v41, %v1302_v51  ;;  %v700_v53 = vpop.f32.mrb[23].mxu1  ;;  %v742_v56 = vmul.f32 0.01, %v706_v48  ;;  %vm726_vm13 = vcmp.gt.f32.partialorder %v706_v48, 0.0 }
 0x2cf   :  { %v740_v57 = vmul.f32 0.01, %v698_v50  ;;  %v701_v58 = vadd.f32 %v1302_v51, %v700_v53  ;;  %vm724_vm12 = vcmp.gt.f32.partialorder %v698_v50, 0.0 }
 0x2d0   :  { %798 = vadd.xlane.f32.xlu0 %v774_v54  ;;  %v743_v60 = vmul.f32 0.01, %v709_v52  ;;  %vm727_vm15 = vcmp.gt.f32.partialorder %v709_v52, 0.0  ;;  %v758_v1 = vsel %vm726_vm13, %v706_v48, %v742_v56 }
 0x2d1   :  { %v741_v61 = vmul.f32 0.01, %v701_v58  ;;  %800 = vadd.xlane.f32.xlu1 %v775_v55  ;;  %v756_v62 = vsel %vm724_vm12, %v698_v50, %v740_v57  ;;  %vm725_vm14 = vcmp.gt.f32.partialorder %v701_v58, 0.0  ;;  %v780_v51 = vmul.f32 %v1310_v59, %v758_v1 }
 0x2d2   :  { %v778_v63 = vmul.f32 %v1310_v59, %v756_v62  ;;  %v759_v3 = vsel %vm727_vm15, %v709_v52, %v743_v60 }
 0x2d3   :  { %v757_v0 = vsel %vm725_vm14, %v701_v58, %v741_v61  ;;  %v781_v4 = vmul.f32 %v1310_v59, %v759_v3 }
 0x2d4   :  { %806 = vadd.xlane.f32.xlu0 %v778_v63  ;;  %v779_v2 = vmul.f32 %v1310_v59, %v757_v0 }
 0x2d6   :  { %808 = vadd.xlane.f32.xlu1 %v779_v2 }
 0x2d8   :  { %810 = vadd.xlane.f32.xlu0 %v780_v51 }
 0x2da   :  { %812 = vadd.xlane.f32.xlu1 %v781_v4 }
 0x348   :  { %v787_v6 = vpop.xlane.xlu1 %786 }
 0x349   :  { %v817_v7 = vadd.f32 %v814_v5, %v787_v6  ;;  %v783_v8 = vpop.xlane.xlu0 %782 }
 0x34a   :  { %v815_v9 = vadd.f32 %v814_v5, %v783_v8 }
 0x34b   :  { %834 = vst.msk [vmem:[%s1415_s7 + $0x10] sm:$0xff] %vm831_vm0, %v817_v7 }
 0x34c   :  { %832 = vst.msk [vmem:[%s1415_s7] sm:$0xff] %vm831_vm0, %v815_v9  ;;  %v789_v59 = vpop.xlane.xlu1 %788 }
 0x34d   :  { %v818_v10 = vadd.f32 %v814_v5, %v789_v59  ;;  %v785_v11 = vpop.xlane.xlu0 %784 }
 0x34e   :  { %v816_v12 = vadd.f32 %v814_v5, %v785_v11 }
 0x34f   :  { %835 = vst.msk [vmem:[%s1415_s7 + $0x18] sm:$0xff] %vm831_vm0, %v818_v10 }
 0x350   :  { %833 = vst.msk [vmem:[%s1415_s7 + $0x8] sm:$0xff] %vm831_vm0, %v816_v12 }
 0x351   :  { %v795_v13 = vpop.xlane.xlu0 %794 }
 0x352   :  { %v821_v14 = vadd.f32 %v814_v5, %v795_v13  ;;  %v797_v15 = vpop.xlane.xlu1 %796 }
 0x353   :  { %v822_v16 = vadd.f32 %v814_v5, %v797_v15 }
 0x354   :  { %838 = vst.msk [vmem:[%s1415_s7 + $0x30] sm:$0xff] %vm831_vm0, %v821_v14 }
 0x355   :  { %839 = vst.msk [vmem:[%s1415_s7 + $0x38] sm:$0xff] %vm831_vm0, %v822_v16  ;;  %v791_v17 = vpop.xlane.xlu0 %790 }
 0x356   :  { %v819_v18 = vadd.f32 %v814_v5, %v791_v17  ;;  %v793_v19 = vpop.xlane.xlu1 %792 }
 0x357   :  { %v820_v20 = vadd.f32 %v814_v5, %v793_v19 }
 0x358   :  { %836 = vst.msk [vmem:[%s1415_s7 + $0x20] sm:$0xff] %vm831_vm0, %v819_v18 }
 0x359   :  { %837 = vst.msk [vmem:[%s1415_s7 + $0x28] sm:$0xff] %vm831_vm0, %v820_v20  ;;  %v803_v21 = vpop.xlane.xlu0 %802 }
 0x35a   :  { %v825_v22 = vadd.f32 %v814_v5, %v803_v21  ;;  %v805_v23 = vpop.xlane.xlu1 %804 }
 0x35b   :  { %v826_v24 = vadd.f32 %v814_v5, %v805_v23 }
 0x35c   :  { %842 = vst.msk [vmem:[%s1415_s7 + $0x50] sm:$0xff] %vm831_vm0, %v825_v22 }
 0x35d   :  { %843 = vst.msk [vmem:[%s1415_s7 + $0x58] sm:$0xff] %vm831_vm0, %v826_v24  ;;  %v799_v25 = vpop.xlane.xlu0 %798 }
 0x35e   :  { %v823_v26 = vadd.f32 %v814_v5, %v799_v25  ;;  %v801_v30 = vpop.xlane.xlu1 %800 }
 0x35f   :  { %v824_v31 = vadd.f32 %v814_v5, %v801_v30 }
 0x360   :  { %840 = vst.msk [vmem:[%s1415_s7 + $0x40] sm:$0xff] %vm831_vm0, %v823_v26 }
 0x361   :  { %841 = vst.msk [vmem:[%s1415_s7 + $0x48] sm:$0xff] %vm831_vm0, %v824_v31  ;;  %v807_v32 = vpop.xlane.xlu0 %806 }
 0x362   :  { %v827_v33 = vadd.f32 %v814_v5, %v807_v32 }
 0x363   :  { %v809_v27 = vpop.xlane.xlu1 %808 }
 0x364   :  { %844 = vst.msk [vmem:[%s1415_s7 + $0x60] sm:$0xff] %vm831_vm0, %v827_v33  ;;  %v828_v34 = vadd.f32 %v814_v5, %v809_v27 }
 0x365   :  { %v811_v35 = vpop.xlane.xlu0 %810 }
 0x366   :  { %845 = vst.msk [vmem:[%s1415_s7 + $0x68] sm:$0xff] %vm831_vm0, %v828_v34  ;;  %v829_v36 = vadd.f32 %v814_v5, %v811_v35 }
 0x367   :  { %v813_v37 = vpop.xlane.xlu1 %812 }
 0x368   :  { %846 = vst.msk [vmem:[%s1415_s7 + $0x70] sm:$0xff] %vm831_vm0, %v829_v36  ;;  %v830_v38 = vadd.f32 %v814_v5, %v813_v37 }
 0x36a   :  { %847 = vst.msk [vmem:[%s1415_s7 + $0x78] sm:$0xff] %vm831_vm0, %v830_v38 }

</bundles_post_ra>
